<compile_context>
chip_gen: v7x
topology: tpu7x:2x2x1
jax: 0.10.0
libtpu: 0.0.40
codegen_flags: <defaults>
</compile_context>

<pallas_src>
import jax
import jax.numpy as jnp
from jax import lax
from jax.experimental import pallas as pl
from jax.experimental.pallas import tpu as pltpu


def _min_value(dtype):
    dtype = jnp.dtype(dtype)
    if jnp.issubdtype(dtype, jnp.floating):
        return float("-inf")
    return jnp.iinfo(dtype).min


def _row_max_kernel(x_ref, o_ref):
    """Single reduction block per row tile: plain per-row max."""
    o_ref[...] = jnp.max(x_ref[...], axis=-1, keepdims=True)


def _make_acc_kernel(n_rem, dtype):
    """Running-max kernel over a (TM, TN) tile.

    Grid = (row_tiles, reduction_tiles).  The output block index is constant
    along the reduction axis, so o_ref stays resident in VMEM and acts as the
    max accumulator.
    """

    def kernel(x_ref, o_ref):
        k = pl.program_id(1)
        x = x_ref[...]

        if n_rem != 0:
            # Last reduction block overhangs N: mask the padded columns with
            # the dtype minimum so they never win the max.
            last = pl.num_programs(1) - 1
            col = lax.broadcasted_iota(jnp.int32, x.shape, dimension=1)
            fill = jnp.full(x.shape, _min_value(dtype), dtype=x.dtype)
            x = jnp.where((k != last) | (col < n_rem), x, fill)

        tile_max = jnp.max(x, axis=-1, keepdims=True)

        @pl.when(k == 0)
        def _():
            o_ref[...] = tile_max

        @pl.when(k != 0)
        def _():
            o_ref[...] = jnp.maximum(o_ref[...], tile_max)

    return kernel


def mac(x, *, target_tile_bytes=4 * 1024 * 1024):
    """MAC pooling. x: (B, C, H, W) -> (B, C, 1, 1), max over spatial dims."""
    B, C, H, W = x.shape
    M = B * C
    N = H * W
    xf = x.reshape(M, N)

    itemsize = jnp.dtype(x.dtype).itemsize
    sublane = max(8, 32 // itemsize)  # f32 -> 8, bf16 -> 16, int8 -> 32

    if N * itemsize * sublane <= target_tile_bytes:
        # ---- Common case: the whole spatial extent fits one tile. ----------
        tm_budget = (target_tile_bytes // (N * itemsize)) // sublane * sublane
        tm_budget = max(sublane, tm_budget)
        TM = M if M <= tm_budget else tm_budget

        out2d = pl.pallas_call(
            _row_max_kernel,
            out_shape=jax.ShapeDtypeStruct((M, 1), x.dtype),
            grid=(pl.cdiv(M, TM),),
            in_specs=[pl.BlockSpec((TM, N), lambda i: (i, 0))],
            out_specs=pl.BlockSpec((TM, 1), lambda i: (i, 0)),
            compiler_params=pltpu.CompilerParams(
                dimension_semantics=("parallel",)),
        )(xf)
    else:
        # ---- Huge feature map: also tile the reduction (lane) axis. --------
        TM = M if M <= sublane else sublane
        tn_budget = (target_tile_bytes // (TM * itemsize)) // 128 * 128
        TN = max(128, tn_budget)
        if TN >= N:
            TN = N
        n_rem = N % TN  # 0 -> no in-kernel masking code is generated

        out2d = pl.pallas_call(
            _make_acc_kernel(n_rem, x.dtype),
            out_shape=jax.ShapeDtypeStruct((M, 1), x.dtype),
            grid=(pl.cdiv(M, TM), pl.cdiv(N, TN)),
            in_specs=[pl.BlockSpec((TM, TN), lambda i, k: (i, k))],
            out_specs=pl.BlockSpec((TM, 1), lambda i, k: (i, 0)),
            compiler_params=pltpu.CompilerParams(
                dimension_semantics=("parallel", "arbitrary")),
        )(xf)

    return out2d.reshape(B, C, 1, 1)


if __name__ == "__main__":
    key = jax.random.PRNGKey(0)

    # Primary check (spec-sized example).
    B, C, H, W = 2, 4, 16, 16
    x = jax.random.normal(key, (B, C, H, W), dtype=jnp.float32)
    y = mac(x)
    jax.block_until_ready(y)
    y_ref = jnp.max(x, axis=(2, 3), keepdims=True)
    assert y.shape == (B, C, 1, 1), y.shape
    assert jnp.allclose(y, y_ref), "MAC kernel mismatch vs reference"

    # Odd-shape check (B*C not a multiple of 8, H*W not a multiple of 128).
    x2 = jax.random.normal(jax.random.PRNGKey(1), (3, 5, 7, 7), dtype=jnp.float32)
    y2 = mac(x2)
    jax.block_until_ready(y2)
    y2_ref = jnp.max(x2, axis=(2, 3), keepdims=True)
    assert y2.shape == (3, 5, 1, 1), y2.shape
    assert jnp.allclose(y2, y2_ref), "MAC kernel mismatch vs reference (odd shape)"

    # Tiled-reduction path (force it with a small tile budget; ragged last
    # reduction block exercises the in-kernel mask).
    x3 = jax.random.normal(jax.random.PRNGKey(2), (2, 4, 63, 63), dtype=jnp.float32)
    y3 = mac(x3, target_tile_bytes=64 * 1024)
    jax.block_until_ready(y3)
    y3_ref = jnp.max(x3, axis=(2, 3), keepdims=True)
    assert y3.shape == (2, 4, 1, 1), y3.shape
    assert jnp.allclose(y3, y3_ref), "MAC kernel mismatch vs reference (tiled reduction)"

    print("KERNEL_OK")
</pallas_src>

<mosaic_0001>
module attributes {stable_mosaic.version = 11 : i64} {
  func.func @_row_max_kernel(%arg0: i32, %arg1: memref<8x256xf32, #tpu.memory_space<vmem>>, %arg2: memref<8x1xf32, #tpu.memory_space<vmem>>) attributes {dimension_semantics = [#tpu.dimension_semantics<parallel>], iteration_bounds = array<i64: 1>, scalar_prefetch = 0 : i64, scratch_operands = 0 : i64, tpu.core_type = #tpu.core_type<tc>, window_params = [{transform_indices = @transform_0, window_bounds = array<i64: 8, 256>}, {transform_indices = @transform_1, window_bounds = array<i64: 8, 1>}]} {
    %c0 = arith.constant 0 : index
    %c0_0 = arith.constant 0 : index
    %0 = vector.load %arg1[%c0, %c0_0] : memref<8x256xf32, #tpu.memory_space<vmem>>, vector<8x256xf32>
    %cst = arith.constant dense<0xFF800000> : vector<8xf32>
    %1 = vector.multi_reduction <maximumf>, %0, %cst [1] : vector<8x256xf32> to vector<8xf32>
    %2 = vector.shape_cast %1 : vector<8xf32> to vector<8x1xf32>
    %c0_1 = arith.constant 0 : index
    %c0_2 = arith.constant 0 : index
    %3 = vector.load %arg2[%c0_1, %c0_2] : memref<8x1xf32, #tpu.memory_space<vmem>>, vector<8x1xf32>
    tpu.vector_store %arg2[%c0_1, %c0_2], %2 {strides = array<i32>} : memref<8x1xf32, #tpu.memory_space<vmem>>, vector<8x1xf32>,
    return
  }
  func.func @transform_0(%arg0: i32) -> (i32, i32) {
    %c0_i32 = arith.constant 0 : i32
    %c0_i32_0 = arith.constant 0 : i32
    return %arg0, %c0_i32 : i32, i32
  }
  func.func @transform_1(%arg0: i32) -> (i32, i32) {
    %c0_i32 = arith.constant 0 : i32
    %c0_i32_0 = arith.constant 0 : i32
    return %arg0, %c0_i32 : i32, i32
  }
}

</mosaic_0001>

<bundles_post_ra>
// kernel: tpu_custom_call.1
= control target key start
LH: loop header
LB: loop body
LE: loop exit
PB: predicated region body
PF: predicated region fallthrough
CT: control target
= control target key end

     0   :  { %6 = vsyncpa [#allocation3], 0  ;;  %s57_s6 = smov [#allocation2]   ;;  %s83_s0 = inlined_call_operand.hbm [shape: f32[8,256], index: 0, kind: input, shape index: {}]   ;;  %s84_s1 = inlined_call_operand.vmem [shape: f32[8,1], index: 1, kind: output, shape index: {}]  }
   0x1   :  { %s13_s7 = sshll.u32 %s57_s6, 4  ;;  %s33_s10 = scalar_lea.hbm %s83_s0, 256  ;;  %s14_s7 = int_to_ptr.vmem [resolvable:$true] %s13_s7 }
   0x2   :  { %p34_p0 = scmp.ne.s32.totalorder %s83_s0, %s33_s10  ;;  %p37_p1 = scmp.lt.u32.totalorder %s33_s10, %s83_s0 }
   0x4   :  { %p39_p2 = pnand %p37_p1, %p34_p0 }
   0x6   :  { %42 = shalt.err (!%p39_p2)
}
   0x7   :  { %s43_s15 = scalar_lea.vmem %s14_s7, 256  ;;  %p48_p4 = scmp.lt.s32.totalorder %s14_s7, %s14_s7 }
   0x8   :  { %p44_p3 = scmp.ne.s32.totalorder %s14_s7, %s43_s15  ;;  %p49_p5 = scmp.lt.s32.totalorder %s43_s15, %s43_s15 }
   0xa   :  { %p50_p6 = por %p49_p5, %p48_p4 }
   0xc   :  { %p51_p7 = pnand %p50_p6, %p44_p3 }
   0xe   :  { %54 = shalt.err (!%p51_p7)
}
   0xf   :  { %16 = dma.hbm_to_vmem [thread:$0]  %s83_s0, 256, %s14_s7, [#allocation3]  }
  0x10   :  { %55 = dma.done.wait [#allocation3], 256  }
  0x11   :  { %56 = vsyncadd [#allocation3], 4294967040  ;;  %v20_v0 = vld [vmem:[#allocation2] sm:$0xff]  ;;  %v21_v1 = vld [vmem:[#allocation2 + $0x8] sm:$0xff]  ;;  %vm25_vm0 = vcmask 7168  }
  0x12   :  { %v22_v2 = vmax.f32 %v20_v0, %v21_v1 }
  0x14   :  { %23 = vmax.xlane.f32.xlu0 %v22_v2 }
  0xa1   :  { %v24_v3 = vpop.xlane.xlu0 %23 }
  0xa2   :  { %26 = vst.msk [vmem:[%s84_s1] sm:$0xff] %vm25_vm0, %v24_v3 }
  0xa3   :  { %31 = vsyncpa [#allocation3], 1 }

</bundles_post_ra>
